<compile_context>
chip_gen: v5e
topology: v5e:2x2
jax: 0.10.0
libtpu: 0.0.40
codegen_flags: <defaults>
</compile_context>

<pallas_src>
import functools

import jax
import jax.numpy as jnp
from jax.experimental import pallas as pl
from jax.experimental.pallas import tpu as pltpu

LOGSTD_MIN = -10.0
LOGSTD_MAX = 2.0

_LANE = 128      # vreg lane width (last dim)


def _round_up(x: int, m: int) -> int:
    return (x + m - 1) // m * m


@functools.lru_cache(maxsize=None)
def _vmem_budget_bytes() -> int:
    """Generation-aware scoped-VMEM ceiling (~75% of physical, per TensorCore)."""
    try:
        cap = int(pltpu.get_tpu_info().vmem_capacity_bytes)
    except Exception:
        cap = 64 * 2**20            # conservative fallback (v7x-sized VMEM)
    return cap * 3 // 4             # v5e/v6e -> ~96 MiB, v7x -> ~48 MiB


def _action_seq_kernel(obs_ref, w1_ref, b1_ref, w2_ref, b2_ref, out_ref, h_ref,
                       *, sa, head_tile, aligned_split):
    """One (batch-tile, head-column-tile) grid step of the fused 2-layer MLP."""
    j = pl.program_id(1)

    # Hidden layer, computed once per batch tile (j == 0) and staged in a VMEM
    # scratch so it is reused across head-column tiles and never spills vregs.
    @pl.when(j == 0)
    def _():
        h = jnp.dot(obs_ref[...], w1_ref[...], preferred_element_type=jnp.float32)
        h = jnp.maximum(h + b1_ref[...], 0.0)          # f32 bias + ReLU (v5e-safe)
        h_ref[...] = h.astype(h_ref.dtype)

    # Fused head matmul: packed [mean | log_std] columns in a single MXU pass.
    out = jnp.dot(h_ref[...], w2_ref[...], preferred_element_type=jnp.float32)
    out = out + b2_ref[...]

    if aligned_split:
        # sa is a multiple of 128 and the head is a single resident tile:
        # static lane-aligned split -> no redundant transcendentals, no XLU.
        out_ref[:, :sa] = jnp.tanh(out[:, :sa])
        out_ref[:, sa:] = jnp.exp(jnp.clip(out[:, sa:], LOGSTD_MIN, LOGSTD_MAX))
    else:
        # Lane-index select (pure VPU).  Padding columns get exp(clip(0)) = 1 and
        # are sliced off in the wrapper; masked edge-batch rows are dropped on store.
        col = j * head_tile + jax.lax.broadcasted_iota(jnp.int32, out.shape, 1)
        out_ref[...] = jnp.where(col < sa,
                                 jnp.tanh(out),
                                 jnp.exp(jnp.clip(out, LOGSTD_MIN, LOGSTD_MAX)))


def prepare_action_sequence_params(w1, b1, w2, b2, *, segment_len, action_dim,
                                   compute_dtype=jnp.float32):
    """One-time cast/pad of parameters.  Do this once, not per forward call."""
    sa = segment_len * action_dim
    pw = _round_up(2 * sa, _LANE)
    cd = jnp.dtype(compute_dtype)
    w1 = jnp.asarray(w1)
    b1 = jnp.asarray(b1).reshape(1, -1)
    w2 = jnp.asarray(w2)
    b2 = jnp.asarray(b2).reshape(1, -1)
    assert w2.shape[-1] == 2 * sa and b2.shape[-1] == 2 * sa
    return {
        "w1": w1.astype(cd),
        "b1": b1.astype(jnp.float32),
        "w2": jnp.pad(w2.astype(cd), ((0, 0), (0, pw - 2 * sa))),
        "b2": jnp.pad(b2.astype(jnp.float32), ((0, 0), (0, pw - 2 * sa))),
    }


@functools.partial(
    jax.jit,
    static_argnames=("segment_len", "action_dim", "batch_tile", "head_tile"))
def action_sequence_forward_prepared(obs, params, *, segment_len, action_dim,
                                     batch_tile=512, head_tile=None):
    """Pallas-backed ActionSequenceModel.forward using pre-prepared parameters.

    obs: (B, obs_dim) float32.  Returns (mean, std), each (B, S, A) float32.
    """
    B, obs_dim = obs.shape
    hidden = params["w1"].shape[1]
    pw = params["w2"].shape[1]                 # packed, lane-dense head width
    sa = segment_len * action_dim
    cd = jnp.dtype(params["w1"].dtype)
    in_itm = cd.itemsize
    sub = 8 * (4 // in_itm)                    # f32 -> 8 rows/vreg, bf16 -> 16

    obs_c = obs.astype(cd)                     # no-op on the f32 default path

    # ---- head-column tiling: keep packed W2 resident if the budget allows ----
    budget = _vmem_budget_bytes()
    slack = 2 * 2**20                                      # compiler scratch headroom
    w1_bytes = obs_dim * hidden * in_itm + hidden * 4      # single-buffered residents

    def _w2_bytes(tn, bufs):
        return bufs * (hidden * tn * in_itm + tn * 4)

    def _row_bytes(tn):
        # obs tile (2 bufs) + packed out tile (2 bufs, f32) + hidden scratch, per row
        return 2 * obs_dim * in_itm + 2 * tn * 4 + hidden * in_itm

    if head_tile is not None:
        tn = min(pw, _round_up(head_tile, _LANE))
    else:
        tn = pw
        while (budget - slack - w1_bytes - _w2_bytes(tn, 1 if tn == pw else 2)
               < sub * _row_bytes(tn)) and tn > 256:
            tn = max(256, _round_up(tn // 2, _LANE))
    gn = pl.cdiv(pw, tn)
    w2_resident = gn == 1
    avail = budget - slack - w1_bytes - _w2_bytes(tn, 1 if w2_resident else 2)

    # ---- batch tiling: as large as the budget allows; >=2 tiles for megacore ----
    tb = _round_up(min(batch_tile, _round_up(B, sub)), sub)
    if avail > 0:
        tb = min(tb, max(sub, (avail // _row_bytes(tn)) // sub * sub))
    else:
        # TODO(synk): also block the hidden dim if W1/W2 alone overflow VMEM.
        tb = sub
    if B > 2 * sub and pl.cdiv(B, tb) < 2:
        tb = max(sub, _round_up(pl.cdiv(B, 2), sub))   # use both v7x TensorCores
    gb = pl.cdiv(B, tb)

    aligned_split = w2_resident and (sa % _LANE == 0)

    def _resident(shape, index_map):
        """Single-buffered spec for grid-invariant (always-resident) operands."""
        try:
            return pl.BlockSpec(shape, index_map, pipeline_mode=pl.Buffered(1))
        except Exception:                      # older JAX without pipeline_mode
            return pl.BlockSpec(shape, index_map)

    const = lambda i, j: (0, 0)
    w2_map = const if w2_resident else (lambda i, j: (0, j))
    mk_w2 = _resident if w2_resident else pl.BlockSpec

    cost = pl.CostEstimate(
        flops=2 * B * (obs_dim * hidden + hidden * pw),
        transcendentals=2 * B * pw,
        bytes_accessed=(B * obs_dim * in_itm
                        + (obs_dim * hidden + hidden * pw) * in_itm
                        + (hidden + pw) * 4
                        + B * pw * 4),
    )

    packed = pl.pallas_call(
        functools.partial(_action_seq_kernel, sa=sa, head_tile=tn,
                          aligned_split=aligned_split),
        out_shape=jax.ShapeDtypeStruct((B, pw), jnp.float32),
        grid=(gb, gn),
        in_specs=[
            pl.BlockSpec((tb, obs_dim), lambda i, j: (i, 0)),   # obs (batch-tiled)
            _resident((obs_dim, hidden), const),                # W1   (resident)
            _resident((1, hidden), const),                      # b1   (resident)
            mk_w2((hidden, tn), w2_map),                        # packed W2
            mk_w2((1, tn), w2_map),                             # packed b2
        ],
        out_specs=pl.BlockSpec((tb, tn), lambda i, j: (i, j)),  # packed [mean|std]
        scratch_shapes=[pltpu.VMEM((tb, hidden), cd)],          # hidden activations
        compiler_params=pltpu.CompilerParams(
            dimension_semantics=("parallel", "arbitrary"),
            vmem_limit_bytes=budget,
        ),
        cost_estimate=cost,
    )(obs_c, params["w1"], params["b1"], params["w2"], params["b2"])

    mean = packed[:, :sa].reshape(B, segment_len, action_dim)
    std = packed[:, sa:2 * sa].reshape(B, segment_len, action_dim)
    return mean, std


def action_sequence_forward(obs, w1, b1, w2, b2, *, segment_len, action_dim,
                            compute_dtype=jnp.float32, batch_tile=512,
                            head_tile=None):
    """Drop-in forward.  For repeated calls, prepare params once and reuse them."""
    params = prepare_action_sequence_params(
        w1, b1, w2, b2, segment_len=segment_len, action_dim=action_dim,
        compute_dtype=compute_dtype)
    return action_sequence_forward_prepared(
        obs, params, segment_len=segment_len, action_dim=action_dim,
        batch_tile=batch_tile, head_tile=head_tile)


def _reference_forward(obs, w1, b1, w2, b2, segment_len, action_dim):
    """Pure-JAX f32 reference (matches PyTorch Linear: y = x @ W + b)."""
    h = jnp.maximum(obs @ w1 + b1, 0.0)
    out = h @ w2 + b2
    sa = segment_len * action_dim
    mean = jnp.tanh(out[:, :sa]).reshape(-1, segment_len, action_dim)
    std = jnp.exp(jnp.clip(out[:, sa:], LOGSTD_MIN, LOGSTD_MAX)).reshape(
        -1, segment_len, action_dim)
    return mean, std


if __name__ == "__main__":
    # Small shapes consistent with the module's forward.
    batch, obs_dim, action_dim, hidden_dim, segment_len = 2, 16, 4, 32, 8
    out_dim = 2 * segment_len * action_dim      # mean + log_std, flattened

    key = jax.random.PRNGKey(0)
    (k_obs, k_w1, k_b1, k_w2, k_b2,
     k_big, k_w2b, k_b2b, k_obs2) = jax.random.split(key, 9)

    obs = jax.random.normal(k_obs, (batch, obs_dim), dtype=jnp.float32)
    w1 = jax.random.normal(k_w1, (obs_dim, hidden_dim), dtype=jnp.float32) * 0.1
    b1 = jax.random.normal(k_b1, (1, hidden_dim), dtype=jnp.float32) * 0.01
    w2 = jax.random.normal(k_w2, (hidden_dim, out_dim), dtype=jnp.float32) * 0.1
    b2 = jax.random.normal(k_b2, (1, out_dim), dtype=jnp.float32) * 0.01

    # --- f32 path, prepared params, tiny batch (packed-output mask split) ---
    params = prepare_action_sequence_params(
        w1, b1, w2, b2, segment_len=segment_len, action_dim=action_dim)
    mean, std = action_sequence_forward_prepared(
        obs, params, segment_len=segment_len, action_dim=action_dim)
    jax.block_until_ready((mean, std))
    m_ref, s_ref = _reference_forward(obs, w1, b1, w2, b2, segment_len, action_dim)
    assert mean.shape == (batch, segment_len, action_dim)
    assert std.shape == (batch, segment_len, action_dim)
    assert jnp.allclose(mean, m_ref, atol=1e-5), "mean mismatch (f32)"
    assert jnp.allclose(std, s_ref, atol=1e-5), "std mismatch (f32)"
    assert bool(jnp.all(std > 0.0)), "std must be positive"

    # --- larger batch: multi-tile, non-divisible batch grid (masked edge block) ---
    big_b = 100
    obs_big = jax.random.normal(k_big, (big_b, obs_dim), dtype=jnp.float32)
    mean_b, std_b = action_sequence_forward_prepared(
        obs_big, params, segment_len=segment_len, action_dim=action_dim,
        batch_tile=64)
    jax.block_until_ready((mean_b, std_b))
    m_refb, s_refb = _reference_forward(obs_big, w1, b1, w2, b2,
                                        segment_len, action_dim)
    assert jnp.allclose(mean_b, m_refb, atol=1e-5), "mean mismatch (f32, batch-tiled)"
    assert jnp.allclose(std_b, s_refb, atol=1e-5), "std mismatch (f32, batch-tiled)"

    # --- lane-aligned head (S*A % 128 == 0): static-split path, plus the
    #     column-tiled streamed-W2 fallback forced via head_tile=128 ---
    seg2, act2, batch2 = 32, 8, 4
    out_dim2 = 2 * seg2 * act2
    w2b = jax.random.normal(k_w2b, (hidden_dim, out_dim2), dtype=jnp.float32) * 0.1
    b2b = jax.random.normal(k_b2b, (1, out_dim2), dtype=jnp.float32) * 0.01
    obs2 = jax.random.normal(k_obs2, (batch2, obs_dim), dtype=jnp.float32)
    params2 = prepare_action_sequence_params(
        w1, b1, w2b, b2b, segment_len=seg2, action_dim=act2)
    m_ref2, s_ref2 = _reference_forward(obs2, w1, b1, w2b, b2b, seg2, act2)
    for ht in (None, 128):
        mean2, std2 = action_sequence_forward_prepared(
            obs2, params2, segment_len=seg2, action_dim=act2, head_tile=ht)
        jax.block_until_ready((mean2, std2))
        assert jnp.allclose(mean2, m_ref2, atol=1e-5), f"mean mismatch (head_tile={ht})"
        assert jnp.allclose(std2, s_ref2, atol=1e-5), f"std mismatch (head_tile={ht})"

    # --- bf16 weights/activations, f32 accumulation + f32 elementwise tail ---
    mean_h, std_h = action_sequence_forward(
        obs, w1, b1, w2, b2, segment_len=segment_len, action_dim=action_dim,
        compute_dtype=jnp.bfloat16)
    jax.block_until_ready((mean_h, std_h))
    assert jnp.allclose(mean_h, m_ref, atol=5e-2), "mean mismatch (bf16)"
    assert jnp.allclose(std_h, s_ref, atol=5e-2, rtol=5e-2), "std mismatch (bf16)"
    assert bool(jnp.all(std_h > 0.0)), "std must be positive (bf16)"

    print("KERNEL_OK")
</pallas_src>

<mosaic_0001>
module attributes {stable_mosaic.version = 11 : i64} {
  func.func @_action_seq_kernel(%arg0: i32, %arg1: i32, %arg2: memref<8x16xf32, #tpu.memory_space<vmem>>, %arg3: memref<16x32xf32, #tpu.memory_space<vmem>>, %arg4: memref<1x32xf32, #tpu.memory_space<vmem>>, %arg5: memref<32x128xf32, #tpu.memory_space<vmem>>, %arg6: memref<1x128xf32, #tpu.memory_space<vmem>>, %arg7: memref<8x128xf32, #tpu.memory_space<vmem>>, %arg8: memref<8x32xf32, #tpu.memory_space<vmem>>) attributes {dimension_semantics = [#tpu.dimension_semantics<parallel>, #tpu.dimension_semantics<arbitrary>], iteration_bounds = array<i64: 1, 1>, scalar_prefetch = 0 : i64, scratch_operands = 1 : i64, tpu.core_type = #tpu.core_type<tc>, window_params = [{transform_indices = @transform_0, window_bounds = array<i64: 8, 16>}, {pipeline_mode = #tpu.pipeline_mode<synchronous>, transform_indices = @transform_1, window_bounds = array<i64: 16, 32>}, {pipeline_mode = #tpu.pipeline_mode<synchronous>, transform_indices = @transform_2, window_bounds = array<i64: 1, 32>}, {pipeline_mode = #tpu.pipeline_mode<synchronous>, transform_indices = @transform_3, window_bounds = array<i64: 32, 128>}, {pipeline_mode = #tpu.pipeline_mode<synchronous>, transform_indices = @transform_4, window_bounds = array<i64: 1, 128>}, {transform_indices = @transform_5, window_bounds = array<i64: 8, 128>}]} {
    %c0_i32 = arith.constant 0 : i32
    %0 = arith.cmpi eq, %arg1, %c0_i32 : i32
    %1 = arith.extui %0 : i1 to i32
    %c0_i32_0 = arith.constant 0 : i32
    %2 = arith.cmpi ne, %1, %c0_i32_0 : i32
    scf.if %2 {
      %c0_10 = arith.constant 0 : index
      %c0_11 = arith.constant 0 : index
      %23 = vector.load %arg2[%c0_10, %c0_11] : memref<8x16xf32, #tpu.memory_space<vmem>>, vector<8x16xf32>
      %c0_12 = arith.constant 0 : index
      %c0_13 = arith.constant 0 : index
      %24 = vector.load %arg3[%c0_12, %c0_13] : memref<16x32xf32, #tpu.memory_space<vmem>>, vector<16x32xf32>
      %cst_14 = arith.constant dense<0.000000e+00> : vector<8x32xf32>
      %25 = tpu.matmul %23, %24, %cst_14 {dimension_numbers = #tpu.dot_dimension_numbers<[1], [0], [0], [1], [0, 0, 1, 1], [], []>} : vector<8x16xf32>, vector<16x32xf32>, vector<8x32xf32> -> vector<8x32xf32>
      %c0_15 = arith.constant 0 : index
      %c0_16 = arith.constant 0 : index
      %26 = vector.load %arg4[%c0_15, %c0_16] : memref<1x32xf32, #tpu.memory_space<vmem>>, vector<1x32xf32>
      %27 = vector.broadcast %26 : vector<1x32xf32> to vector<8x32xf32>
      %28 = arith.addf %25, %27 : vector<8x32xf32>
      %cst_17 = arith.constant 0.000000e+00 : f32
      %29 = vector.broadcast %cst_17 : f32 to vector<8x32xf32>
      %30 = arith.maximumf %28, %29 : vector<8x32xf32>
      %c0_18 = arith.constant 0 : index
      %c0_19 = arith.constant 0 : index
      %31 = vector.load %arg8[%c0_18, %c0_19] : memref<8x32xf32, #tpu.memory_space<vmem>>, vector<8x32xf32>
      tpu.vector_store %arg8[%c0_18, %c0_19], %30 {strides = array<i32>} : memref<8x32xf32, #tpu.memory_space<vmem>>, vector<8x32xf32>,
    } else {
    }
    %c0 = arith.constant 0 : index
    %c0_1 = arith.constant 0 : index
    %3 = vector.load %arg8[%c0, %c0_1] : memref<8x32xf32, #tpu.memory_space<vmem>>, vector<8x32xf32>
    %c0_2 = arith.constant 0 : index
    %c0_3 = arith.constant 0 : index
    %4 = vector.load %arg5[%c0_2, %c0_3] : memref<32x128xf32, #tpu.memory_space<vmem>>, vector<32x128xf32>
    %cst = arith.constant dense<0.000000e+00> : vector<8x128xf32>
    %5 = tpu.matmul %3, %4, %cst {dimension_numbers = #tpu.dot_dimension_numbers<[1], [0], [0], [1], [0, 0, 1, 1], [], []>} : vector<8x32xf32>, vector<32x128xf32>, vector<8x128xf32> -> vector<8x128xf32>
    %c0_4 = arith.constant 0 : index
    %c0_5 = arith.constant 0 : index
    %6 = vector.load %arg6[%c0_4, %c0_5] : memref<1x128xf32, #tpu.memory_space<vmem>>, vector<1x128xf32>
    %7 = vector.broadcast %6 : vector<1x128xf32> to vector<8x128xf32>
    %8 = arith.addf %5, %7 : vector<8x128xf32>
    %c128_i32 = arith.constant 128 : i32
    %9 = arith.muli %arg1, %c128_i32 : i32
    %10 = tpu.iota {dimensions = array<i32: 1>} : vector<8x128xi32>
    %11 = vector.broadcast %9 : i32 to vector<8x128xi32>
    %12 = arith.addi %11, %10 : vector<8x128xi32>
    %c32_i32 = arith.constant 32 : i32
    %13 = vector.broadcast %c32_i32 : i32 to vector<8x128xi32>
    %14 = arith.cmpi slt, %12, %13 : vector<8x128xi32>
    %15 = math.tanh %8 : vector<8x128xf32>
    %cst_6 = arith.constant -1.000000e+01 : f32
    %cst_7 = arith.constant 2.000000e+00 : f32
    %16 = vector.broadcast %cst_6 : f32 to vector<8x128xf32>
    %17 = arith.maximumf %16, %8 : vector<8x128xf32>
    %18 = vector.broadcast %cst_7 : f32 to vector<8x128xf32>
    %19 = arith.minimumf %18, %17 : vector<8x128xf32>
    %20 = math.exp %19 : vector<8x128xf32>
    %21 = arith.select %14, %15, %20 : vector<8x128xi1>, vector<8x128xf32>
    %c0_8 = arith.constant 0 : index
    %c0_9 = arith.constant 0 : index
    %22 = vector.load %arg7[%c0_8, %c0_9] : memref<8x128xf32, #tpu.memory_space<vmem>>, vector<8x128xf32>
    tpu.vector_store %arg7[%c0_8, %c0_9], %21 {strides = array<i32>} : memref<8x128xf32, #tpu.memory_space<vmem>>, vector<8x128xf32>,
    return
  }
  func.func @transform_0(%arg0: i32, %arg1: i32) -> (i32, i32) {
    %c0_i32 = arith.constant 0 : i32
    %c0_i32_0 = arith.constant 0 : i32
    return %arg0, %c0_i32 : i32, i32
  }
  func.func @transform_1(%arg0: i32, %arg1: i32) -> (i32, i32) {
    %c0_i32 = arith.constant 0 : i32
    %c0_i32_0 = arith.constant 0 : i32
    %c0_i32_1 = arith.constant 0 : i32
    return %c0_i32, %c0_i32_0 : i32, i32
  }
  func.func @transform_2(%arg0: i32, %arg1: i32) -> (i32, i32) {
    %c0_i32 = arith.constant 0 : i32
    %c0_i32_0 = arith.constant 0 : i32
    %c0_i32_1 = arith.constant 0 : i32
    return %c0_i32, %c0_i32_0 : i32, i32
  }
  func.func @transform_3(%arg0: i32, %arg1: i32) -> (i32, i32) {
    %c0_i32 = arith.constant 0 : i32
    %c0_i32_0 = arith.constant 0 : i32
    %c0_i32_1 = arith.constant 0 : i32
    return %c0_i32, %c0_i32_0 : i32, i32
  }
  func.func @transform_4(%arg0: i32, %arg1: i32) -> (i32, i32) {
    %c0_i32 = arith.constant 0 : i32
    %c0_i32_0 = arith.constant 0 : i32
    %c0_i32_1 = arith.constant 0 : i32
    return %c0_i32, %c0_i32_0 : i32, i32
  }
  func.func @transform_5(%arg0: i32, %arg1: i32) -> (i32, i32) {
    %c0_i32 = arith.constant 0 : i32
    return %arg0, %arg1 : i32, i32
  }
}

</mosaic_0001>

<bundles_post_ra>
// kernel: action_sequence_forward_prepared.1
= control target key start
LH: loop header
LB: loop body
LE: loop exit
PB: predicated region body
PF: predicated region fallthrough
CT: control target
= control target key end

     0   :  { %10 = vsyncpa [#allocation4], 0  ;;  %s383_s0 = inlined_call_operand.hbm [shape: f32[2,16], index: 0, kind: input, shape index: {}]   ;;  %s384_s1 = inlined_call_operand.hbm [shape: f32[16,32], index: 1, kind: input, shape index: {}]   ;;  %s385_s2 = inlined_call_operand.hbm [shape: f32[1,32], index: 2, kind: input, shape index: {}]   ;;  %s386_s3 = inlined_call_operand.hbm [shape: f32[32,128], index: 3, kind: input, shape index: {}]   ;;  %s387_s4 = inlined_call_operand.vmem [shape: f32[1,128], index: 4, kind: input, shape index: {}]   ;;  %s388_s5 = inlined_call_operand.vmem [shape: f32[2,128], index: 5, kind: output, shape index: {}]  }
   0x1   :  { %11 = vsyncpa [#allocation6], 0 }
   0x2   :  { %12 = vsyncpa [#allocation9], 0  ;;  %s30_s20 = sshll.u32 %s384_s1, 4  ;;  %s31_s20 = int_to_ptr.hbm [resolvable:$true] %s30_s20 }
   0x3   :  { %16 = vsyncadd [#allocation4], 96  ;;  %s327_s21 = smov [#allocation5]   ;;  %s17_s25 = sshll.u32 %s383_s0, 4  ;;  %s18_s25 = int_to_ptr.hbm [resolvable:$true] %s17_s25 }
   0x4   :  { %s32_s22 = sshll.u32 %s327_s21, 4  ;;  %s328_s26 = smov 128   ;;  %s33_s22 = int_to_ptr.vmem [resolvable:$true] %s32_s22 }
   0x5   :  { %s329_s27 = smov 8   ;;  %s330_s28 = smov [#allocation3]  }
   0x6   :  { %38 = dma.hbm_to_vmem [thread:$0]  %s31_s20, 256, %s33_s22, [#allocation6], %s328_s26, %s328_s26, %s329_s27  }
   0x7   :  { %s19_s29 = sshll.u32 %s330_s28, 4  ;;  %s331_s30 = smov 32   ;;  %s20_s29 = int_to_ptr.vmem [resolvable:$true] %s19_s29 }
   0x8   :  { %s332_s6 = smov 2   ;;  %s44_s8 = sshll.u32 %s385_s2, 4  ;;  %s45_s8 = int_to_ptr.hbm [resolvable:$true] %s44_s8 }
   0x9   :  { %25 = dma.hbm_to_vmem [thread:$0]  %s18_s25, 32, %s20_s29, [#allocation4], %s331_s30, %s331_s30, %s332_s6  }
   0xa   :  { %s333_s9 = smov [#allocation7]   ;;  %s54_s12 = sshll.u32 %s386_s3, 4  ;;  %s55_s12 = int_to_ptr.hbm [resolvable:$true] %s54_s12 }
   0xb   :  { %s46_s10 = sshll.u32 %s333_s9, 4  ;;  %s334_s13 = smov [#allocation8]   ;;  %s47_s10 = int_to_ptr.vmem [resolvable:$true] %s46_s10 }
   0xc   :  { %49 = dma.hbm_to_vmem [thread:$0]  %s45_s8, 16, %s47_s10, [#allocation6]  }
   0xd   :  { %s56_s14 = sshll.u32 %s334_s13, 4  ;;  %s57_s14 = int_to_ptr.vmem [resolvable:$true] %s56_s14 }
   0xe   :  { %62 = dma.hbm_to_vmem [thread:$0]  %s55_s12, 512, %s57_s14, [#allocation9], %s328_s26, %s328_s26, %s329_s27  }
   0xf   :  { %321 = dma.done.wait [#allocation4], 128  }
  0x10   :  { %322 = vsyncadd [#allocation4], 4294967168 }
  0x11   :  { %323 = dma.done.wait [#allocation6], 272  }
  0x12   :  { %324 = vsyncadd [#allocation6], 4294967024 }
  0x13   :  { %325 = dma.done.wait [#allocation9], 512  }
  0x14   :  { %326 = vsyncadd [#allocation9], 4294966784  ;;  %v87_v0 = vld [vmem:[#allocation5 + $0x8] sm:$0xff]  ;;  %v86_v1 = vld [vmem:[#allocation5] sm:$0xff]  ;;  %vm92_vm0 = vcmask 130048   ;;  %vm117_vm1 = vcmask 261120   ;;  %v153_v16 = vlaneseq }
  0x15   :  { %110 = vmatpush.msra.mxu0 %v87_v0  ;;  %v85_v2 = vld [vmem:[#allocation3] sm:$0xff]  ;;  %v123_v3 = vld [vmem:[#allocation8 + $0x18] sm:$0xff]  ;;  %v122_v4 = vld [vmem:[#allocation8 + $0x10] sm:$0xff] }
  0x16   :  { %144 = vmatpush.msra.mxu1 %v123_v3  ;;  %v121_v5 = vld [vmem:[#allocation8 + $0x8] sm:$0xff]  ;;  %v120_v6 = vld [vmem:[#allocation8] sm:$0xff]  ;;  %v219_v7 = vld [vmem:[#allocation7] ss:$0 sm:$0xff]  ;;  %v154_v19 = vand.u32 127, %v153_v16 }
  0x17   :  { %111 = vmatpush.msra.mxu0 %v86_v1  ;;  %v220_v12 = vld [vmem:[%s387_s4] ss:$0 sm:$0xff] }
  0x18   :  { %209 = vmatmul.msk.f32.vlgmr.msra.gmra.mxu0 %vm92_vm0, %v85_v2  ;;  %145 = vmatpush.msra.mxu1 %v122_v4  ;;  %vm157_vm2 = vcmp.lt.s32.totalorder %v154_v19, 32 }
  0x1a   :  { %146 = vmatpush.msra.mxu1 %v121_v5 }
  0x1c   :  { %147 = vmatpush.msra.mxu1 %v120_v6 }
  0x95   :  { %v113_v8 = vpop.f32.mrf.mxu0 }
  0x96   :  { %v114_v9 = vadd.f32 %v219_v7, %v113_v8 }
  0x98   :  { %v116_v10 = vmax.f32 %v114_v9, 0.0 }
  0x9a   :  { %118 = vst.msk [vmem:[#allocation2] sm:$0xff] %vm117_vm1, %v116_v10 }
  0xa1   :  { %v119_v11 = vld [vmem:[#allocation2] sm:$0xff] }
  0xa2   :  { %210 = vmatmul.msk.f32.vlgmr.msra.gmra.mxu1 %vm117_vm1, %v119_v11 }
 0x11f   :  { %v149_v13 = vpop.f32.mrf.mxu1 }
 0x120   :  { %v150_v14 = vadd.f32 %v220_v12, %v149_v13 }
 0x122   :  { %v159_v15 = vmax.f32 %v150_v14, -10.0  ;;  %221 = vtanh.f32 %v150_v14 }
 0x124   :  { %v160_v17 = vmin.f32 %v159_v15, 2.0 }
 0x126   :  { %v161_v18 = vmul.f32 1.442695, %v160_v17 }
 0x128   :  { %223 = vpow2.f32 %v161_v18  ;;  %v222_v20 = vpop.eup %221 }
 0x12e   :  { %v224_v21 = vpop.eup %223 }
 0x12f   :  { %v163_v22 = vsel %vm157_vm2, %v222_v20, %v224_v21 }
 0x130   :  { %164 = vst [vmem:[#allocation10] sm:$0xff] %v163_v22 }
 0x137   :  { %v183_v23 = vld [vmem:[#allocation10] sm:$0x3] }
 0x138   :  { %184 = vst [vmem:[%s388_s5] sm:$0x3] %v183_v23 }
 0x139   :  { %202 = vsyncpa [#allocation4], 1 }
 0x13a   :  { %203 = vsyncpa [#allocation6], 1 }
 0x13b   :  { %204 = vsyncpa [#allocation9], 1 }

</bundles_post_ra>
